<compile_context>
chip_gen: v5e
topology: v5e:2x2
jax: 0.10.0
libtpu: 0.0.40
codegen_flags: <defaults>
</compile_context>

<pallas_src>
import math
import functools

import jax
import jax.numpy as jnp
from jax.experimental import pallas as pl
from jax.experimental.pallas import tpu as pltpu


def _vmem_budget_bytes():
    """~75% of this chip's physical VMEM (fallback: v7x's 64 MiB per core)."""
    cap = 64 << 20
    try:
        cap = int(getattr(pltpu.get_tpu_info(), "vmem_capacity_bytes", cap)) or cap
    except Exception:
        pass
    return (cap * 3) // 4


def _block_footprint_bytes(tq, S, D, itemsizes):
    """VMEM bytes for one grid step with Pallas' default 2-deep pipelining."""
    q_it, k_it, v_it, s_it, m_it, o_it = itemsizes
    dbl = 2                                     # double-buffered pipelined blocks
    fp = dbl * tq * S * (s_it + m_it)           # str_mat + attn_mask row tiles
    fp += dbl * S * D * (k_it + v_it)           # full-row K and V tiles
    fp += dbl * tq * D * (q_it + o_it)          # Q tile + output tile
    fp += 3 * tq * S * 4                        # f32 scores / exp / structural softmax
    return fp


def _pick_q_tile(B, S, D, itemsizes, budget):
    """Largest query-row tile that fits the VMEM budget.

    Prefers MXU-friendly multiples of 128 (then 64/32/16/8 for short S); among
    fitting tiles, prefers one that leaves >= 2 parallel grid steps so v7x's two
    TensorCores both get work.  Awkward S is handled by padding the query axis
    at the wrapper, never by whole-S fallback blocks.
    """
    s_pad8 = -(-S // 8) * 8
    cands = [c for c in (256, 128, 64, 32, 16, 8) if c <= s_pad8] or [s_pad8]
    fitting = [c for c in cands if _block_footprint_bytes(c, S, D, itemsizes) <= budget]
    if not fitting:
        # Even the smallest tile overflows the budget (very long S): a
        # flash-style kv-tiled rewrite is required; fall back to the smallest.
        return cands[-1]
    for tq in fitting:                          # descending order
        if B * (-(-S // tq)) >= 2:              # v7x: keep both TensorCores busy
            return tq
    return fitting[0]


def inr_attn_kernel(q_ref, k_ref, v_ref, str_ref, mask_ref, o_ref, *, inv_scale):
    # Block views (leading batch dim squeezed away by the BlockSpecs):
    #   q_ref: (TQ, D)   k_ref/v_ref: (S, D)   str_ref/mask_ref: (TQ, S)
    q = q_ref[...]
    k = k_ref[...]
    v = v_ref[...]

    # MXU operands in bf16 when inputs are f32 (f32 operands run the MXU in slow
    # multi-pass emulation); accumulation stays f32 via preferred_element_type.
    mxu_dt = jnp.bfloat16 if q.dtype == jnp.float32 else q.dtype
    # Fold 1/sqrt(D) into Q: O(TQ*D) VPU work instead of O(TQ*S) on the scores.
    q = (q.astype(jnp.float32) * jnp.float32(inv_scale)).astype(mxu_dt)
    k = k.astype(mxu_dt)

    # Q @ K^T without materializing a transposed K tile: contract over D on the
    # MXU (same as einsum 'qd,kd->qk'), f32 accumulation.
    scores = jax.lax.dot_general(
        q, k,
        dimension_numbers=(((1,), (1,)), ((), ())),
        preferred_element_type=jnp.float32)                    # (TQ, S) f32

    # Structural prior: mask (native-dtype compare), row-softmax in f32, add.
    sm = str_ref[...].astype(jnp.float32)
    keep = mask_ref[...] != 0
    sm = jnp.where(keep, sm, jnp.float32(-1.0e9))
    sm = sm - jnp.max(sm, axis=-1, keepdims=True)
    e = jnp.exp(sm)
    str_soft = e * pl.reciprocal(jnp.sum(e, axis=-1, keepdims=True), approx=True)

    scores = scores + str_soft
    # NOTE: the reference's `scores.masked_fill(attn_mask==0, -1e9)` result is
    # discarded (non-in-place), so attn_mask does NOT re-mask the scores.

    scores = scores - jnp.max(scores, axis=-1, keepdims=True)
    p = jnp.exp(scores)
    prob = p * pl.reciprocal(jnp.sum(p, axis=-1, keepdims=True), approx=True)

    # Dropout == identity in eval mode.
    pv_dt = jnp.bfloat16 if v.dtype == jnp.float32 else v.dtype
    out = jnp.dot(prob.astype(pv_dt), v.astype(pv_dt),
                  preferred_element_type=jnp.float32)
    o_ref[...] = out.astype(o_ref.dtype)


def inr_attn(query, key, value, str_mat, attn_mask):
    B, S, D = query.shape
    assert key.shape == (B, S, D) and value.shape == (B, S, D)
    assert str_mat.shape == (B, S, S) and attn_mask.shape == (B, S, S)

    out_dtype = query.dtype
    itemsizes = (query.dtype.itemsize, key.dtype.itemsize, value.dtype.itemsize,
                 str_mat.dtype.itemsize, attn_mask.dtype.itemsize,
                 jnp.dtype(out_dtype).itemsize)
    budget = _vmem_budget_bytes()
    tq = _pick_q_tile(B, S, D, itemsizes, budget)

    # Pad the query axis (rows of Q / str_mat / attn_mask) up to a multiple of
    # the tile; padded rows see an all-zero mask (softmax stays finite) and are
    # sliced off afterwards.
    Sq = -(-S // tq) * tq
    if Sq != S:
        pad = Sq - S
        query = jnp.pad(query, ((0, 0), (0, pad), (0, 0)))
        str_mat = jnp.pad(str_mat, ((0, 0), (0, pad), (0, 0)))
        attn_mask = jnp.pad(attn_mask, ((0, 0), (0, pad), (0, 0)))

    grid = (B, Sq // tq)
    kernel = functools.partial(inr_attn_kernel, inv_scale=1.0 / math.sqrt(D))

    out = pl.pallas_call(
        kernel,
        out_shape=jax.ShapeDtypeStruct((B, Sq, D), out_dtype),
        grid=grid,
        in_specs=[
            pl.BlockSpec((None, tq, D), lambda b, q: (b, q, 0)),   # query (row tile)
            pl.BlockSpec((None, S, D), lambda b, q: (b, 0, 0)),    # key   (all rows)
            pl.BlockSpec((None, S, D), lambda b, q: (b, 0, 0)),    # value (all rows)
            pl.BlockSpec((None, tq, S), lambda b, q: (b, q, 0)),   # str_mat
            pl.BlockSpec((None, tq, S), lambda b, q: (b, q, 0)),   # attn_mask
        ],
        out_specs=pl.BlockSpec((None, tq, D), lambda b, q: (b, q, 0)),
        compiler_params=pltpu.CompilerParams(
            dimension_semantics=("parallel", "parallel"),
            vmem_limit_bytes=int(budget)),
    )(query, key, value, str_mat, attn_mask)

    return out if Sq == S else out[:, :S, :]


def inr_attn_ref(query, key, value, str_mat, attn_mask):
    """Plain-JAX f32 reference mirroring the PyTorch forward."""
    q = query.astype(jnp.float32)
    k = key.astype(jnp.float32)
    v = value.astype(jnp.float32)
    s = str_mat.astype(jnp.float32)
    scale = math.sqrt(query.shape[-1])
    scores = jnp.einsum("bqd,bkd->bqk", q, k) / scale
    sm = jnp.where(attn_mask == 0, -1.0e9, s)
    scores = scores + jax.nn.softmax(sm, axis=-1)
    # attn_mask is not re-applied to `scores` — matches the non-in-place
    # masked_fill in the PyTorch module.
    prob = jax.nn.softmax(scores, axis=-1)
    return jnp.einsum("bqk,bkd->bqd", prob, v)


if __name__ == "__main__":
    B, S, D = 2, 8, 32
    key0 = jax.random.PRNGKey(0)
    kq, kk, kv, ks, km = jax.random.split(key0, 5)

    query = jax.random.normal(kq, (B, S, D), dtype=jnp.float32)
    keyt = jax.random.normal(kk, (B, S, D), dtype=jnp.float32)
    value = jax.random.normal(kv, (B, S, D), dtype=jnp.float32)
    # str_mat streamed as bf16 (halves the dominant (S,S) HBM stream); the
    # kernel upcasts to f32 for the softmax math.
    str_mat = jax.random.normal(ks, (B, S, S), dtype=jnp.float32).astype(jnp.bfloat16)
    # int8 mask: 4x smaller HBM stream than f32; compared in native dtype.
    attn_mask = jax.random.bernoulli(km, 0.7, (B, S, S)).astype(jnp.int8)

    out = jax.block_until_ready(inr_attn(query, keyt, value, str_mat, attn_mask))
    ref = inr_attn_ref(query, keyt, value, str_mat, attn_mask)

    assert out.shape == (B, S, D)
    # Tolerance covers bf16 MXU operands (f32 accumulation) and the EUP
    # approximate reciprocals in the two softmax denominators (inference-grade).
    assert jnp.allclose(out, ref, atol=3e-2, rtol=3e-2), "mismatch vs reference"

    print("KERNEL_OK")
</pallas_src>

<mosaic_0001>
module attributes {stable_mosaic.version = 11 : i64} {
  func.func @inr_attn_kernel(%arg0: i32, %arg1: i32, %arg2: memref<1x8x32xf32, #tpu.memory_space<vmem>>, %arg3: memref<1x8x32xf32, #tpu.memory_space<vmem>>, %arg4: memref<1x8x32xf32, #tpu.memory_space<vmem>>, %arg5: memref<1x8x8xbf16, #tpu.memory_space<vmem>>, %arg6: memref<1x8x8xi8, #tpu.memory_space<vmem>>, %arg7: memref<1x8x32xf32, #tpu.memory_space<vmem>>) attributes {dimension_semantics = [#tpu.dimension_semantics<parallel>, #tpu.dimension_semantics<parallel>], iteration_bounds = array<i64: 2, 1>, scalar_prefetch = 0 : i64, scratch_operands = 0 : i64, tpu.core_type = #tpu.core_type<tc>, window_params = [{transform_indices = @transform_0, window_bounds = array<i64: 1, 8, 32>}, {transform_indices = @transform_1, window_bounds = array<i64: 1, 8, 32>}, {transform_indices = @transform_2, window_bounds = array<i64: 1, 8, 32>}, {transform_indices = @transform_3, window_bounds = array<i64: 1, 8, 8>}, {transform_indices = @transform_4, window_bounds = array<i64: 1, 8, 8>}, {transform_indices = @transform_5, window_bounds = array<i64: 1, 8, 32>}]} {
    %c0 = arith.constant 0 : index
    %c0_0 = arith.constant 0 : index
    %c0_1 = arith.constant 0 : index
    %0 = vector.load %arg2[%c0, %c0_0, %c0_1] : memref<1x8x32xf32, #tpu.memory_space<vmem>>, vector<1x8x32xf32>
    %1 = vector.shape_cast %0 : vector<1x8x32xf32> to vector<8x32xf32>
    %c0_2 = arith.constant 0 : index
    %c0_3 = arith.constant 0 : index
    %c0_4 = arith.constant 0 : index
    %2 = vector.load %arg3[%c0_2, %c0_3, %c0_4] : memref<1x8x32xf32, #tpu.memory_space<vmem>>, vector<1x8x32xf32>
    %3 = vector.shape_cast %2 : vector<1x8x32xf32> to vector<8x32xf32>
    %c0_5 = arith.constant 0 : index
    %c0_6 = arith.constant 0 : index
    %c0_7 = arith.constant 0 : index
    %4 = vector.load %arg4[%c0_5, %c0_6, %c0_7] : memref<1x8x32xf32, #tpu.memory_space<vmem>>, vector<1x8x32xf32>
    %5 = vector.shape_cast %4 : vector<1x8x32xf32> to vector<8x32xf32>
    %cst = arith.constant 0.176776692 : f32
    %6 = vector.broadcast %cst : f32 to vector<8x32xf32>
    %7 = arith.mulf %1, %6 : vector<8x32xf32>
    %8 = arith.truncf %7 : vector<8x32xf32> to vector<8x32xbf16>
    %9 = arith.truncf %3 : vector<8x32xf32> to vector<8x32xbf16>
    %cst_8 = arith.constant dense<0.000000e+00> : vector<8x8xf32>
    %10 = tpu.matmul %8, %9, %cst_8 {dimension_numbers = #tpu.dot_dimension_numbers<[1], [1], [0], [0], [0, 0, 1, 0], [], []>} : vector<8x32xbf16>, vector<8x32xbf16>, vector<8x8xf32> -> vector<8x8xf32>
    %c0_9 = arith.constant 0 : index
    %c0_10 = arith.constant 0 : index
    %c0_11 = arith.constant 0 : index
    %11 = vector.load %arg5[%c0_9, %c0_10, %c0_11] : memref<1x8x8xbf16, #tpu.memory_space<vmem>>, vector<1x8x8xbf16>
    %12 = vector.shape_cast %11 : vector<1x8x8xbf16> to vector<8x8xbf16>
    %13 = arith.extf %12 : vector<8x8xbf16> to vector<8x8xf32>
    %c0_12 = arith.constant 0 : index
    %c0_13 = arith.constant 0 : index
    %c0_14 = arith.constant 0 : index
    %14 = vector.load %arg6[%c0_12, %c0_13, %c0_14] : memref<1x8x8xi8, #tpu.memory_space<vmem>>, vector<1x8x8xi8>
    %15 = vector.shape_cast %14 : vector<1x8x8xi8> to vector<8x8xi8>
    %c0_i8 = arith.constant 0 : i8
    %16 = vector.broadcast %c0_i8 : i8 to vector<8x8xi8>
    %17 = arith.cmpi ne, %15, %16 : vector<8x8xi8>
    %cst_15 = arith.constant -1.000000e+09 : f32
    %18 = vector.broadcast %cst_15 : f32 to vector<8x8xf32>
    %19 = arith.select %17, %13, %18 : vector<8x8xi1>, vector<8x8xf32>
    %cst_16 = arith.constant dense<0xFF800000> : vector<8xf32>
    %20 = vector.multi_reduction <maximumf>, %19, %cst_16 [1] : vector<8x8xf32> to vector<8xf32>
    %21 = vector.shape_cast %20 : vector<8xf32> to vector<8x1xf32>
    %22 = vector.broadcast %21 : vector<8x1xf32> to vector<8x8xf32>
    %23 = arith.subf %19, %22 : vector<8x8xf32>
    %24 = math.exp %23 : vector<8x8xf32>
    %cst_17 = arith.constant dense<0.000000e+00> : vector<8xf32>
    %25 = vector.multi_reduction <add>, %24, %cst_17 [1] : vector<8x8xf32> to vector<8xf32>
    %26 = vector.shape_cast %25 : vector<8xf32> to vector<8x1xf32>
    %27 = tpu.reciprocal %26 {approx = true} : vector<8x1xf32> -> vector<8x1xf32>
    %28 = vector.broadcast %27 : vector<8x1xf32> to vector<8x8xf32>
    %29 = arith.mulf %24, %28 : vector<8x8xf32>
    %30 = arith.addf %10, %29 : vector<8x8xf32>
    %cst_18 = arith.constant dense<0xFF800000> : vector<8xf32>
    %31 = vector.multi_reduction <maximumf>, %30, %cst_18 [1] : vector<8x8xf32> to vector<8xf32>
    %32 = vector.shape_cast %31 : vector<8xf32> to vector<8x1xf32>
    %33 = vector.broadcast %32 : vector<8x1xf32> to vector<8x8xf32>
    %34 = arith.subf %30, %33 : vector<8x8xf32>
    %35 = math.exp %34 : vector<8x8xf32>
    %cst_19 = arith.constant dense<0.000000e+00> : vector<8xf32>
    %36 = vector.multi_reduction <add>, %35, %cst_19 [1] : vector<8x8xf32> to vector<8xf32>
    %37 = vector.shape_cast %36 : vector<8xf32> to vector<8x1xf32>
    %38 = tpu.reciprocal %37 {approx = true} : vector<8x1xf32> -> vector<8x1xf32>
    %39 = vector.broadcast %38 : vector<8x1xf32> to vector<8x8xf32>
    %40 = arith.mulf %35, %39 : vector<8x8xf32>
    %41 = arith.truncf %40 : vector<8x8xf32> to vector<8x8xbf16>
    %42 = arith.truncf %5 : vector<8x32xf32> to vector<8x32xbf16>
    %cst_20 = arith.constant dense<0.000000e+00> : vector<8x32xf32>
    %43 = tpu.matmul %41, %42, %cst_20 {dimension_numbers = #tpu.dot_dimension_numbers<[1], [0], [0], [1], [0, 0, 1, 1], [], []>} : vector<8x8xbf16>, vector<8x32xbf16>, vector<8x32xf32> -> vector<8x32xf32>
    %c0_21 = arith.constant 0 : index
    %c0_22 = arith.constant 0 : index
    %c0_23 = arith.constant 0 : index
    %44 = vector.load %arg7[%c0_21, %c0_22, %c0_23] : memref<1x8x32xf32, #tpu.memory_space<vmem>>, vector<1x8x32xf32>
    %45 = vector.shape_cast %44 : vector<1x8x32xf32> to vector<8x32xf32>
    %46 = vector.shape_cast %43 : vector<8x32xf32> to vector<1x8x32xf32>
    tpu.vector_store %arg7[%c0_21, %c0_22, %c0_23], %46 {strides = array<i32>} : memref<1x8x32xf32, #tpu.memory_space<vmem>>, vector<1x8x32xf32>,
    return
  }
  func.func @transform_0(%arg0: i32, %arg1: i32) -> (i32, i32, i32) {
    %c0_i32 = arith.constant 0 : i32
    %c0_i32_0 = arith.constant 0 : i32
    return %arg0, %arg1, %c0_i32 : i32, i32, i32
  }
  func.func @transform_1(%arg0: i32, %arg1: i32) -> (i32, i32, i32) {
    %c0_i32 = arith.constant 0 : i32
    %c0_i32_0 = arith.constant 0 : i32
    %c0_i32_1 = arith.constant 0 : i32
    return %arg0, %c0_i32, %c0_i32_0 : i32, i32, i32
  }
  func.func @transform_2(%arg0: i32, %arg1: i32) -> (i32, i32, i32) {
    %c0_i32 = arith.constant 0 : i32
    %c0_i32_0 = arith.constant 0 : i32
    %c0_i32_1 = arith.constant 0 : i32
    return %arg0, %c0_i32, %c0_i32_0 : i32, i32, i32
  }
  func.func @transform_3(%arg0: i32, %arg1: i32) -> (i32, i32, i32) {
    %c0_i32 = arith.constant 0 : i32
    %c0_i32_0 = arith.constant 0 : i32
    return %arg0, %arg1, %c0_i32 : i32, i32, i32
  }
  func.func @transform_4(%arg0: i32, %arg1: i32) -> (i32, i32, i32) {
    %c0_i32 = arith.constant 0 : i32
    %c0_i32_0 = arith.constant 0 : i32
    return %arg0, %arg1, %c0_i32 : i32, i32, i32
  }
  func.func @transform_5(%arg0: i32, %arg1: i32) -> (i32, i32, i32) {
    %c0_i32 = arith.constant 0 : i32
    %c0_i32_0 = arith.constant 0 : i32
    return %arg0, %arg1, %c0_i32 : i32, i32, i32
  }
}

</mosaic_0001>

<bundles_post_ra>
// kernel: tpu_custom_call.1
= control target key start
LH: loop header
LB: loop body
LE: loop exit
PB: predicated region body
PF: predicated region fallthrough
CT: control target
= control target key end

     0   :  { %s1282_s0 = inlined_call_operand.hbm [shape: f32[2,8,32], index: 0, kind: input, shape index: {}]   ;;  %s1283_s1 = inlined_call_operand.hbm [shape: f32[2,8,32], index: 1, kind: input, shape index: {}]   ;;  %s1284_s2 = inlined_call_operand.hbm [shape: f32[2,8,32], index: 2, kind: input, shape index: {}]   ;;  %s1285_s3 = inlined_call_operand.hbm [shape: bf16[2,8,8], index: 3, kind: input, shape index: {}]   ;;  %s1286_s4 = inlined_call_operand.hbm [shape: s8[2,8,8], index: 4, kind: input, shape index: {}]   ;;  %s1287_s5 = inlined_call_operand.hbm [shape: f32[2,8,32], index: 5, kind: output, shape index: {}]  }
   0x1   :  { %1294 = sst [smem:[#allocation22_spill]] %s1282_s0 }
   0x2   :  { %1295 = sst [smem:[#allocation23_spill]] %s1283_s1 }
   0x3   :  { %1296 = sst [smem:[#allocation24_spill]] %s1285_s3 }
   0x4   :  { %10 = vsyncpa [#allocation3], 0 }
   0x5   :  { %12 = vsyncpa [#allocation3 + $0x1], 0 }
   0x6   :  { %13 = vsyncpa [#allocation6], 0 }
   0x7   :  { %15 = vsyncpa [#allocation6 + $0x1], 0 }
   0x8   :  { %16 = vsyncpa [#allocation9], 0 }
   0x9   :  { %18 = vsyncpa [#allocation9 + $0x1], 0 }
   0xa   :  { %19 = vsyncpa [#allocation4], 0 }
   0xb   :  { %21 = vsyncpa [#allocation4 + $0x1], 0  ;;  %s1074_s18 = smov 0   ;;  %s1076_s19 = smov 0  }
   0xc   :  { %s1078_s20 = smov 0   ;;  %s1080_s21 = smov 0  }
   0xd   :  { %s1082_s22 = smov 0   ;;  %s1084_s23 = smov 0  }
   0xe LB: > { %1297 = sst [smem:[#allocation16_spill]] %s1021_s18  ;;  %s1105_s24 = sadd.s32 4294967295, %s1041_s23   ;;  %s1041_s23 = sphi %s1084_s23, %s27_s23   ;;  %s1037_s22 = sphi %s1082_s22, %s1321_s22   ;;  %s1033_s21 = sphi %s1080_s21, %s1320_s21   ;;  %s1029_s20 = sphi %s1078_s20, %s1316_s20   ;;  %s1025_s19 = sphi %s1076_s19, %s1319_s19   ;;  %s1021_s18 = sphi %s1074_s18, %s1318_s18  }
   0xf   : > { %1298 = sst [smem:[#allocation17_spill]] %s1029_s20  ;;  %s684_s25 = sadd.s32 4294967294, %s1041_s23  }
  0x10   : > { %1299 = sst [smem:[#allocation18_spill]] %s1041_s23  ;;  %s39_s26 = sadd.s32 1, %s1037_s22 }
  0x11   : > { %s48_s27 = sadd.s32 1, %s1029_s20  ;;  %p41_p0 = scmp.ge.s32.totalorder %s39_s26, 2 }
  0x12   : > { %p55_p1 = scmp.ne.s32.totalorder %s1029_s20, %s1025_s19  ;;  %p56_p2 = scmp.eq.s32.totalorder %s1041_s23, 0 }
  0x13   : > { %p61_p3 = scmp.ne.s32.totalorder %s1025_s19, %s1021_s18  ;;  %s1323_s26 = smov (%p41_p0, %s39_s26), 0 }
  0x14   : > { %1300 = sst [smem:[#allocation19_spill]] %s1323_s26  ;;  %p1117_p4 = por %p56_p2, %p55_p1 }
  0x15   : > { %p62_p5 = scmp.eq.s32.totalorder %s1105_s24, 0  ;;  %s43_s29 = ssub.s32 %s1037_s22, %s1323_s26 }
  0x16   : > { %p195_p6 = scmp.eq.s32.totalorder %s1105_s24, 1  ;;  %p46_p7 = scmp.eq.s32.totalorder %s43_s29, 0 }
  0x17   : > { %p1125_p8 = por %p62_p5, %p61_p3  ;;  %p201_p10 = scmp.eq.s32.totalorder %s684_s25, 1 }
  0x18   : > { %p1129_p9 = por %p195_p6, %p55_p1  ;;  %p686_p12 = scmp.ge.s32.totalorder %s1041_s23, 2 }
  0x19   : > { %s1134_s7 = scalar_select %p46_p7, %s1029_s20, %s48_s27  }
  0x1a   : > { %p1136_p11 = por %p201_p10, %p61_p3  ;;  %p742_p13 = scmp.lt.s32.totalorder %s1041_s23, 2 }
  0x1b   : > { %1304 = sst [smem:[#allocation20_spill]] %s1134_s7  ;;  %s1143_s9 = sand.u32 1, %s1029_s20  }
  0x1c   : > { %s1305_s8 = scalar_select %p1136_p11, 1, 0 }
  0x1d   : > { %s1146_s10 = sshll.u32 %s1143_s9, 3  ;;  %s1149_s11 = sshll.u32 %s1037_s22, 3 }
  0x1e   : > { %1306 = sst [smem:[#allocation21_spill]] %s1305_s8  ;;  %p1153_p0 = pnand %p742_p13, %p1117_p4 }
  0x1f   : > { %s241_s13 = sand.u32 1, %s1041_s23   ;;  %s1308_s1 = sld [smem:[#allocation23_spill]] }
  0x20   : > { %s245_s25 = scalar_lea.vmem [#allocation5], %s1146_s10  ;;  %s1163_s29 = scalar_lea.sflag [#allocation6], %s241_s13 }
  0x21   : > { %s253_s27 = sshll.u32 %s245_s25, 4  ;;  %p697_p1 = scmp.ge.s32.totalorder %s1041_s23, 1  ;;  %s254_s27 = int_to_ptr.vmem [resolvable:$true] %s253_s27 }
  0x22   : > { %p317_p2 = scmp.lt.s32.totalorder %s1041_s23, 3  ;;  %s693_s28 = sshll.u32 %s1143_s9, 2 }
  0x23   : > { %s694_s14 = sshll.u32 %s1037_s22, 2  ;;  %s283_s15 = scalar_lea.vmem [#allocation8], %s693_s28 }
  0x24   : > { %p1171_p3 = pnand %p697_p1, %p317_p2  ;;  %s1310_s3 = sld [smem:[#allocation24_spill]] }
  0x25   : > { %s249_s16 = scalar_lea.hbm %s1308_s1, %s1149_s11  ;;  %s1311_s0 = sld [smem:[#allocation22_spill]] }
  0x26   : > { %s251_s17 = sshll.u32 %s249_s16, 4  ;;  %s292_s16 = sshll.u32 %s283_s15, 4  ;;  %s252_s17 = int_to_ptr.hbm [resolvable:$true] %s251_s17  ;;  %s293_s16 = int_to_ptr.vmem [resolvable:$true] %s292_s16 }
  0x27   : > { %728 = dma.hbm_to_vmem [thread:$0]  (!%p1153_p0), %s252_s17, 128, %s254_s27, %s1163_s29  }
  0x28   : > { %s280_s27 = scalar_lea.sflag [#allocation9], %s241_s13  ;;  %s225_s15 = scalar_lea.vmem [#allocation2], %s1146_s10 }
  0x29   : > { %s234_s8 = sshll.u32 %s225_s15, 4  ;;  %s222_s1 = scalar_lea.sflag [#allocation3], %s1143_s9  ;;  %s235_s8 = int_to_ptr.vmem [resolvable:$true] %s234_s8 }
  0x2a   : > { %s288_s7 = scalar_lea.hbm %s1310_s3, %s694_s14  ;;  %s268_s14 = scalar_lea.hbm %s1284_s2, %s1149_s11 }
  0x2b   : > { %s290_s17 = sshll.u32 %s288_s7, 4  ;;  %s230_s28 = scalar_lea.hbm %s1311_s0, %s1149_s11  ;;  %s291_s17 = int_to_ptr.hbm [resolvable:$true] %s290_s17 }
  0x2c   : > { %734 = dma.hbm_to_vmem [thread:$0]  (!%p1153_p0), %s291_s17, 64, %s293_s16, %s280_s27  }
  0x2d   : > { %s232_s18 = sshll.u32 %s230_s28, 4  ;;  %s264_s16 = scalar_lea.vmem [#allocation7], %s1146_s10  ;;  %s233_s18 = int_to_ptr.hbm [resolvable:$true] %s232_s18 }
  0x2e   : > { %725 = dma.hbm_to_vmem [thread:$0]  (!%p1153_p0), %s233_s18, 128, %s235_s8, %s222_s1  }
  0x2f   : > { %s272_s25 = sshll.u32 %s264_s16, 4  ;;  %s270_s20 = sshll.u32 %s268_s14, 4  ;;  %s273_s25 = int_to_ptr.vmem [resolvable:$true] %s272_s25  ;;  %s271_s20 = int_to_ptr.hbm [resolvable:$true] %s270_s20 }
  0x30   : > { %s695_s23 = sshll.u32 %s1143_s9, 1  ;;  %s696_s17 = sshll.u32 %s1037_s22, 1 }
  0x31   : > { %731 = dma.hbm_to_vmem [thread:$0]  (!%p1153_p0), %s271_s20, 128, %s273_s25, %s1163_s29  }
  0x32   : > { %s308_s0 = scalar_lea.hbm %s1286_s4, %s696_s17  ;;  %s303_s3 = scalar_lea.vmem [#allocation10], %s695_s23 }
  0x33   : > { %s312_s18 = sshll.u32 %s303_s3, 4  ;;  %s310_s8 = sshll.u32 %s308_s0, 4  ;;  %s313_s18 = int_to_ptr.vmem [resolvable:$true] %s312_s18  ;;  %s311_s8 = int_to_ptr.hbm [resolvable:$true] %s310_s8 }
  0x34   : > { %737 = dma.hbm_to_vmem [thread:$0]  (!%p1153_p0), %s311_s8, 32, %s313_s18, %s280_s27  }
  0x35   : > { %321 = sbr.rel (%p1171_p3) target bundleno = 720 (0x2d0), region = 40  ;;  %s1207_s9 = sand.u32 (!%p1171_p3), 1, %s1025_s19  }
  0x36   : > { %s1210_s10 = sshll.u32 (!%p1171_p3), %s1207_s9, 3  ;;  %s324_s11 = scalar_lea.sflag (!%p1171_p3), [#allocation3], %s1207_s9 }
  0x37   : > { %s327_s29 = scalar_lea.vmem (!%p1171_p3), [#allocation2], %s1210_s10 }
  0x3a   : > { %1004 = dma.done.wait (%p1125_p8), %s324_s11, 128  }
  0x3b   : > { %1006 = vsyncadd (%p1125_p8), %s324_s11, 4294967168  ;;  %s333_s0 = sand.u32 1, %s1105_s24   ;;  %s337_s26 = scalar_lea.vmem [#allocation5], %s1210_s10 }
  0x3c   : > { %s334_s3 = scalar_lea.sflag [#allocation6], %s333_s0 }
  0x3d   : > { %1008 = dma.done.wait (%p1125_p8), %s334_s3, 256  }
  0x3e   : > { %1010 = vsyncadd (%p1125_p8), %s334_s3, 4294967040  ;;  %s701_s12 = sshll.u32 %s1207_s9, 2  ;;  %s347_s27 = scalar_lea.vmem [#allocation7], %s1210_s10 }
  0x3f   : > { %s354_s1 = scalar_lea.sflag [#allocation9], %s333_s0  ;;  %s357_s7 = scalar_lea.vmem [#allocation8], %s701_s12 }
  0x40   : > { %1012 = dma.done.wait (%p1125_p8), %s354_s1, 96  }
  0x41   : > { %1014 = vsyncadd (%p1125_p8), %s354_s1, 4294967200  ;;  %s702_s24 = sshll.u32 %s1207_s9, 1  ;;  %v424_v0 = vld [vmem:[%s357_s7] sm:$0xf]  ;;  %vm444_vm0 = vcmask 261120   ;;  %v1043_v5 = vmov 0  }
  0x42   : > { %s367_s13 = scalar_lea.vmem [#allocation10], %s702_s24  ;;  %v419_v2 = vld [vmem:[%s337_s26] sm:$0xff]  ;;  %v425_v4 = vunpack.c.l.bf16 %v424_v0  ;;  %vm432_vm2 = vcmask 64512   ;;  %v418_v11 = vld [vmem:[%s327_s29] sm:$0xff]  ;;  %vm480_vm4 = vcmask 1043456   ;;  %s707_s30 = sshll.u32 %s1033_s21, 3 }
  0x43   : > { %v426_v1 = vld [vmem:[%s367_s13] sm:$0x3]  ;;  %v423_v3 = vpack.c.bf16 %v419_v2, %v419_v2  ;;  %v421_v12 = vmul.f32 0.17677669, %v418_v11  ;;  %v420_v31 = vld [vmem:[%s347_s27] sm:$0xff]  ;;  %s510_s25 = scalar_lea.hbm %s1287_s5, %s707_s30  ;;  %s414_s20 = scalar_lea.vmem [#allocation11], %s1210_s10 }
  0x44   : > { %vm427_vm1 = vnez %v426_v1  ;;  %v476_v32 = vpack.c.bf16 %v420_v31, %v420_v31  ;;  %s512_s23 = sshll.u32 %s414_s20, 4  ;;  %s514_s17 = sshll.u32 %s510_s25, 4  ;;  %s513_s23 = int_to_ptr.vmem [resolvable:$true] %s512_s23  ;;  %s515_s17 = int_to_ptr.hbm [resolvable:$true] %s514_s17 }
  0x45   : > { %v428_v6 = vsel %vm427_vm1, 16843009, %v1043_v5  ;;  %v449_v8 = vsel %vm444_vm0, %v423_v3, 0  ;;  %v422_v13 = vpack.c.bf16 %v421_v12, %v421_v12  ;;  %s499_s28 = scalar_lea.sflag [#allocation4], %s1207_s9  ;;  %s965_s15 = sshra.s32 %s515_s17, 4  ;;  %s966_s15 = int_to_ptr.hbm [resolvable:$true] %s965_s15 }
  0x46   : > { %v429_v7 = vunpack.c.0.s8 %v428_v6  ;;  %458 = vmatpush.bf16.xpose.msra.mxu0 %v449_v8  ;;  %v482_v33 = vsel %vm480_vm4, %v476_v32, 0  ;;  %s967_s18 = scalar_lea.hbm %s966_s15, 8  ;;  %s971_s11 = scalar_lea.hbm %s1287_s5, 16 }
  0x47   : > { %491 = vmatpush.bf16.msra.mxu1 %v482_v33  ;;  %p968_p4 = scmp.ne.s32.totalorder %s966_s15, %s967_s18  ;;  %p972_p7 = scmp.lt.s32.totalorder %s966_s15, %s1287_s5 }
  0x48   : > { %vm430_vm3 = vcmp.ne.s32.totalorder %v429_v7, 0  ;;  %p973_p8 = scmp.lt.s32.totalorder %s971_s11, %s967_s18 }
  0x49   : > { %v431_v9 = vsel %vm430_vm3, %v425_v4, -1e+09  ;;  %p969_p5 = pnand %p968_p4, %p1129_p9 }
  0x4a   : > { %v433_v10 = vsel %vm432_vm2, %v431_v9, -inf  ;;  %p974_p10 = por %p973_p8, %p972_p7 }
  0x4b   : > { %434 = vmax.xlane.f32.xlu0 %v433_v10  ;;  %p970_p6 = pneg %p969_p5 }
  0x4d   : > { %704 = vmatmul.msk.bf16.vlgmr.msra.gmra.mxu0 %vm444_vm0, %v422_v13  ;;  %p975_p13 = pnand %p974_p10, %p970_p6 }
  0xbe   : > { %v435_v14 = vpop.xlane.xlu0 %434 }
  0xbf   : > { %v436_v15 = vsub.f32 %v431_v9, %v435_v14 }
  0xc1   : > { %v437_v16 = vmul.f32 1.442695, %v436_v15 }
  0xc3   : > { %793 = vpow2.f32 %v437_v16 }
  0xc9   : > { %v794_v17 = vpop.eup %793 }
  0xca   : > { %v439_v18 = vsel %vm432_vm2, %v794_v17, 0.0  ;;  %v460_v19 = vpop.f32.mrf.mxu0 }
  0xcb   : > { %440 = vadd.xlane.f32.xlu0 %v439_v18 }
  0xd2   : > { %v462_v20 = vpop.f32.mrf.mxu0 }
 0x13e   : > { %v441_v21 = vpop.xlane.xlu0 %440 }
 0x13f   : > { %795 = vrcp.f32 %v441_v21 }
 0x145   : > { %v796_v22 = vpop.eup %795 }
 0x146   : > { %v443_v23 = vmul.f32 %v796_v22, %v794_v17 }
 0x148   : > { %v461_v24 = vadd.f32 %v460_v19, %v443_v23 }
 0x14a   : > { %v464_v25 = vsel %vm432_vm2, %v461_v24, -inf }
 0x14b   : > { %465 = vmax.xlane.f32.xlu1 %v464_v25 }
 0x1be   : > { %v466_v26 = vpop.xlane.xlu1 %465 }
 0x1bf   : > { %v467_v27 = vsub.f32 %v461_v24, %v466_v26 }
 0x1c1   : > { %v468_v28 = vmul.f32 1.442695, %v467_v27 }
 0x1c3   : > { %797 = vpow2.f32 %v468_v28 }
 0x1c9   : > { %v798_v29 = vpop.eup %797 }
 0x1ca   : > { %v470_v30 = vsel %vm432_vm2, %v798_v29, 0.0 }
 0x1cb   : > { %471 = vadd.xlane.f32.xlu1 %v470_v30 }
 0x23e   : > { %v472_v34 = vpop.xlane.xlu1 %471 }
 0x23f   : > { %799 = vrcp.f32 %v472_v34 }
 0x245   : > { %v800_v35 = vpop.eup %799 }
 0x246   : > { %v474_v36 = vmul.f32 %v800_v35, %v798_v29 }
 0x248   : > { %v475_v37 = vpack.c.bf16 %v474_v36, %v474_v36 }
 0x24a   : > { %705 = vmatmul.msk.bf16.vlgmr.msra.gmra.mxu1 %vm432_vm2, %v475_v37 }
 0x2c7   : > { %v493_v38 = vpop.f32.mrf.mxu1 }
 0x2c8   : > { %497 = vst.msk [vmem:[%s414_s20] sm:$0xff] %vm444_vm0, %v493_v38 }
 0x2c9   : > { %978 = shalt.err (!%p975_p13)
}
 0x2ca   : > { %720 = dma.vmem_to_hbm [thread:$0]  (%p1129_p9), %s513_s23, 128, %s515_s17, %s499_s28  }
 0x2cf   : > { %v495_v39 = vpop.f32.mrf.mxu1 }
 0x2d0 PF: > { %s1312_s9 = sld [smem:[#allocation16_spill]]  ;;  %p739_p0 = pnand %p686_p12, %p1136_p11 }
 0x2d1   : > { %s1314_s3 = sld [smem:[#allocation18_spill]] }
 0x2d2   : > { %p740_p1 = pneg %p739_p0 }
 0x2d6   : > { %s526_s26 = sand.u32 1, %s1312_s9  }
 0x2d7   : > { %s527_s12 = scalar_lea.sflag [#allocation4], %s526_s26 }
 0x2d8   : > { %1016 = dma.done.wait (%p740_p1), %s527_s12, 128  }
 0x2d9   : > { %1018 = vsyncadd (%p740_p1), %s527_s12, 4294967168  ;;  %s27_s23 = sadd.s32 1, %s1314_s3   ;;  %s1315_s27 = sld [smem:[#allocation17_spill]] }
 0x2da   : > { %p24_p2 = scmp.ge.s32.totalorder %s27_s23, 4   ;;  %s1316_s20 = sld [smem:[#allocation20_spill]] }
 0x2db   : > { %s1317_s6 = sld [smem:[#allocation19_spill]]  ;;  %s1318_s18 = smov %s1025_s19 }
 0x2dc   : > { %s1320_s21 = smov %s1037_s22 }
 0x2dd   :  { %26 = sbr.rel (!%p24_p2) target bundleno = 14 (0xe), region = 133 }
 0x2df   : > { %s1319_s19 = smov %s1315_s27 }
 0x2e1   : > { %s1321_s22 = smov %s1317_s6 }
 0x2e2   :  { %533 = vsyncpa [#allocation3], 1 }
 0x2e3   :  { %535 = vsyncpa [#allocation3 + $0x1], 1 }
 0x2e4   :  { %536 = vsyncpa [#allocation6], 1 }
 0x2e5   :  { %538 = vsyncpa [#allocation6 + $0x1], 1 }
 0x2e6   :  { %539 = vsyncpa [#allocation9], 1 }
 0x2e7   :  { %541 = vsyncpa [#allocation9 + $0x1], 1 }
 0x2e8   :  { %542 = vsyncpa [#allocation4], 1 }
 0x2e9   :  { %544 = vsyncpa [#allocation4 + $0x1], 1 }

</bundles_post_ra>
